<compile_context>
chip_gen: v7x
topology: tpu7x:2x2x1
jax: 0.10.0
libtpu: 0.0.40
codegen_flags: <defaults>
</compile_context>

<pallas_src>
import functools

import jax
import jax.numpy as jnp
from jax.experimental import pallas as pl
from jax.experimental.pallas import tpu as pltpu


def _rnd_mlp_kernel(x_ref, w1_ref, b1_ref, w2_ref, b2_ref, w3_ref, b3_ref, o_ref):
    """Fused MLP for one batch tile.

    x_ref : (TB, D_in_p)   bf16 VMEM tile
    w*_ref: bf16 VMEM, whole array, resident across all grid steps
    b*_ref: f32  VMEM, (1, H) / (1, D_out)
    o_ref : (TB, D_out)    output tile (bf16 by default)
    """
    x = x_ref[...]

    # Layer 1: Linear + ReLU (bf16 MXU matmul, f32 accumulate; f32 bias/ReLU)
    h = jnp.dot(x, w1_ref[...], preferred_element_type=jnp.float32) + b1_ref[...]
    h = jnp.maximum(h, 0.0).astype(jnp.bfloat16)

    # Layer 2: Linear + ReLU
    h = jnp.dot(h, w2_ref[...], preferred_element_type=jnp.float32) + b2_ref[...]
    h = jnp.maximum(h, 0.0).astype(jnp.bfloat16)

    # Output layer: Linear (no activation); cast only at the final store.
    o_ref[...] = (
        jnp.dot(h, w3_ref[...], preferred_element_type=jnp.float32) + b3_ref[...]
    ).astype(o_ref.dtype)


def _round_up(n, m):
    return pl.cdiv(n, m) * m


@functools.partial(jax.jit, static_argnames=("tile_b", "out_dtype"))
def rnd_forward(x, params, *, tile_b=512, out_dtype=jnp.bfloat16):
    """Pallas forward of RNDNetwork(input_dim, output_dim=128, hidden=128, n_layers=2).

    x      : [batch, input_dim] (any float dtype; cast to bf16 internally)
    params : (w1, b1, w2, b2, w3, b3) with weights laid out [in, out]
    tile_b : batch tile (rows per grid step); multiple of 128 recommended.
    """
    w1, b1, w2, b2, w3, b3 = params
    batch, d_in = x.shape
    hidden = w1.shape[1]
    d_out = w3.shape[1]

    # --- lane-align the input feature dim (pad x cols and w1 rows with zeros) ---
    d_in_p = _round_up(d_in, 128)
    if d_in_p != d_in:
        x = jnp.pad(x, ((0, 0), (0, d_in_p - d_in)))
        w1 = jnp.pad(w1, ((0, d_in_p - d_in), (0, 0)))

    # --- pick batch tile and zero-pad batch so the grid divides evenly ---------
    tb = int(min(tile_b, _round_up(batch, 128)))
    batch_p = _round_up(batch, tb)
    if batch_p != batch:
        x = jnp.pad(x, ((0, batch_p - batch), (0, 0)))

    # --- dtypes: bf16 operands, f32 biases / accumulation ----------------------
    x = x.astype(jnp.bfloat16)
    w1, w2, w3 = (w.astype(jnp.bfloat16) for w in (w1, w2, w3))
    b1, b2, b3 = (b.astype(jnp.float32) for b in (b1, b2, b3))

    grid = (batch_p // tb,)

    # Whole-array, VMEM-resident specs for parameters (no double-buffering,
    # no per-tile re-fetch).
    def resident():
        return pl.BlockSpec(memory_space=pltpu.MemorySpace.VMEM)

    flops = 2 * batch_p * (d_in_p * hidden + hidden * hidden + hidden * d_out)
    bytes_accessed = (
        batch_p * d_in_p * 2                                  # x (bf16)
        + batch_p * d_out * jnp.dtype(out_dtype).itemsize     # output
        + (w1.size + w2.size + w3.size) * 2                   # weights (bf16)
        + (b1.size + b2.size + b3.size) * 4                   # biases (f32)
    )

    out = pl.pallas_call(
        _rnd_mlp_kernel,
        out_shape=jax.ShapeDtypeStruct((batch_p, d_out), out_dtype),
        grid=grid,
        in_specs=[
            pl.BlockSpec((tb, d_in_p), lambda i: (i, 0)),  # x tile (pipelined)
            resident(), resident(),                        # w1, b1
            resident(), resident(),                        # w2, b2
            resident(), resident(),                        # w3, b3
        ],
        out_specs=pl.BlockSpec((tb, d_out), lambda i: (i, 0)),
        compiler_params=pltpu.CompilerParams(
            dimension_semantics=("parallel",),             # megacore-shardable on v7x
        ),
        cost_estimate=pl.CostEstimate(
            flops=int(flops), transcendentals=0, bytes_accessed=int(bytes_accessed)
        ),
    )(x, w1, b1, w2, b2, w3, b3)

    return out[:batch]


def init_rnd_params(key, input_dim, output_dim=128, hidden_size=128, n_layers=2):
    """Deterministic synthetic params (PyTorch nn.Linear-style uniform init).

    Weights are returned already transposed to [in, out] for the kernel layout.
    n_layers=2 matches the default RNDNetwork: Lin+ReLU, Lin+ReLU, Lin.
    """
    assert n_layers == 2, "script instantiates the default n_layers=2 config"
    dims = [(input_dim, hidden_size), (hidden_size, hidden_size), (hidden_size, output_dim)]
    params = []
    for (fan_in, fan_out) in dims:
        key, kw, kb = jax.random.split(key, 3)
        bound = 1.0 / jnp.sqrt(fan_in)
        w = jax.random.uniform(kw, (fan_in, fan_out), jnp.float32, -bound, bound)
        b = jax.random.uniform(kb, (1, fan_out), jnp.float32, -bound, bound)
        params += [w, b]
    return tuple(params)


def rnd_forward_ref(x, params):
    """Plain-JAX reference mirroring the kernel's bf16-operand / f32-accum math."""
    w1, b1, w2, b2, w3, b3 = params
    xb = x.astype(jnp.bfloat16)
    w1b, w2b, w3b = (w.astype(jnp.bfloat16) for w in (w1, w2, w3))
    h = jnp.dot(xb, w1b, preferred_element_type=jnp.float32) + b1
    h = jnp.maximum(h, 0.0).astype(jnp.bfloat16)
    h = jnp.dot(h, w2b, preferred_element_type=jnp.float32) + b2
    h = jnp.maximum(h, 0.0).astype(jnp.bfloat16)
    return jnp.dot(h, w3b, preferred_element_type=jnp.float32) + b3


if __name__ == "__main__":
    key = jax.random.PRNGKey(0)
    k_x, k_p = jax.random.split(key)

    batch, input_dim = 16, 32        # small synthetic input: [batch, input_dim]
    x = jax.random.normal(k_x, (batch, input_dim), dtype=jnp.float32)

    params = init_rnd_params(k_p, input_dim, output_dim=128, hidden_size=128, n_layers=2)

    out = rnd_forward(x, params)     # bf16 output, f32 accumulation inside
    out = jax.block_until_ready(out)

    ref = rnd_forward_ref(x, params)
    assert out.shape == (batch, 128)
    assert jnp.allclose(out.astype(jnp.float32), ref, atol=2e-2, rtol=2e-2), \
        "Pallas output mismatch vs reference"

    print("KERNEL_OK")
</pallas_src>

<mosaic_0001>
module attributes {stable_mosaic.version = 11 : i64} {
  func.func @_rnd_mlp_kernel(%arg0: i32, %arg1: memref<128x128xbf16, #tpu.memory_space<vmem>>, %arg2: memref<128x128xbf16, #tpu.memory_space<vmem>>, %arg3: memref<1x128xf32, #tpu.memory_space<vmem>>, %arg4: memref<128x128xbf16, #tpu.memory_space<vmem>>, %arg5: memref<1x128xf32, #tpu.memory_space<vmem>>, %arg6: memref<128x128xbf16, #tpu.memory_space<vmem>>, %arg7: memref<1x128xf32, #tpu.memory_space<vmem>>, %arg8: memref<128x128xbf16, #tpu.memory_space<vmem>>) attributes {dimension_semantics = [#tpu.dimension_semantics<parallel>], iteration_bounds = array<i64: 1>, scalar_prefetch = 0 : i64, scratch_operands = 0 : i64, tpu.core_type = #tpu.core_type<tc>, window_params = [{transform_indices = @transform_0, window_bounds = array<i64: 128, 128>}, {pipeline_mode = #tpu.pipeline_mode<synchronous>, transform_indices = @transform_1, window_bounds = array<i64: 128, 128>}, {pipeline_mode = #tpu.pipeline_mode<synchronous>, transform_indices = @transform_2, window_bounds = array<i64: 1, 128>}, {pipeline_mode = #tpu.pipeline_mode<synchronous>, transform_indices = @transform_3, window_bounds = array<i64: 128, 128>}, {pipeline_mode = #tpu.pipeline_mode<synchronous>, transform_indices = @transform_4, window_bounds = array<i64: 1, 128>}, {pipeline_mode = #tpu.pipeline_mode<synchronous>, transform_indices = @transform_5, window_bounds = array<i64: 128, 128>}, {pipeline_mode = #tpu.pipeline_mode<synchronous>, transform_indices = @transform_6, window_bounds = array<i64: 1, 128>}, {transform_indices = @transform_7, window_bounds = array<i64: 128, 128>}]} {
    %c0 = arith.constant 0 : index
    %c0_0 = arith.constant 0 : index
    %0 = vector.load %arg1[%c0, %c0_0] : memref<128x128xbf16, #tpu.memory_space<vmem>>, vector<128x128xbf16>
    %c0_1 = arith.constant 0 : index
    %c0_2 = arith.constant 0 : index
    %1 = vector.load %arg2[%c0_1, %c0_2] : memref<128x128xbf16, #tpu.memory_space<vmem>>, vector<128x128xbf16>
    %cst = arith.constant dense<0.000000e+00> : vector<128x128xf32>
    %2 = tpu.matmul %0, %1, %cst {dimension_numbers = #tpu.dot_dimension_numbers<[1], [0], [0], [1], [0, 0, 1, 1], [], []>} : vector<128x128xbf16>, vector<128x128xbf16>, vector<128x128xf32> -> vector<128x128xf32>
    %c0_3 = arith.constant 0 : index
    %c0_4 = arith.constant 0 : index
    %3 = vector.load %arg3[%c0_3, %c0_4] : memref<1x128xf32, #tpu.memory_space<vmem>>, vector<1x128xf32>
    %4 = vector.broadcast %3 : vector<1x128xf32> to vector<128x128xf32>
    %5 = arith.addf %2, %4 : vector<128x128xf32>
    %cst_5 = arith.constant 0.000000e+00 : f32
    %6 = vector.broadcast %cst_5 : f32 to vector<128x128xf32>
    %7 = arith.maximumf %5, %6 : vector<128x128xf32>
    %8 = arith.truncf %7 : vector<128x128xf32> to vector<128x128xbf16>
    %c0_6 = arith.constant 0 : index
    %c0_7 = arith.constant 0 : index
    %9 = vector.load %arg4[%c0_6, %c0_7] : memref<128x128xbf16, #tpu.memory_space<vmem>>, vector<128x128xbf16>
    %cst_8 = arith.constant dense<0.000000e+00> : vector<128x128xf32>
    %10 = tpu.matmul %8, %9, %cst_8 {dimension_numbers = #tpu.dot_dimension_numbers<[1], [0], [0], [1], [0, 0, 1, 1], [], []>} : vector<128x128xbf16>, vector<128x128xbf16>, vector<128x128xf32> -> vector<128x128xf32>
    %c0_9 = arith.constant 0 : index
    %c0_10 = arith.constant 0 : index
    %11 = vector.load %arg5[%c0_9, %c0_10] : memref<1x128xf32, #tpu.memory_space<vmem>>, vector<1x128xf32>
    %12 = vector.broadcast %11 : vector<1x128xf32> to vector<128x128xf32>
    %13 = arith.addf %10, %12 : vector<128x128xf32>
    %cst_11 = arith.constant 0.000000e+00 : f32
    %14 = vector.broadcast %cst_11 : f32 to vector<128x128xf32>
    %15 = arith.maximumf %13, %14 : vector<128x128xf32>
    %16 = arith.truncf %15 : vector<128x128xf32> to vector<128x128xbf16>
    %c0_12 = arith.constant 0 : index
    %c0_13 = arith.constant 0 : index
    %17 = vector.load %arg6[%c0_12, %c0_13] : memref<128x128xbf16, #tpu.memory_space<vmem>>, vector<128x128xbf16>
    %cst_14 = arith.constant dense<0.000000e+00> : vector<128x128xf32>
    %18 = tpu.matmul %16, %17, %cst_14 {dimension_numbers = #tpu.dot_dimension_numbers<[1], [0], [0], [1], [0, 0, 1, 1], [], []>} : vector<128x128xbf16>, vector<128x128xbf16>, vector<128x128xf32> -> vector<128x128xf32>
    %c0_15 = arith.constant 0 : index
    %c0_16 = arith.constant 0 : index
    %19 = vector.load %arg7[%c0_15, %c0_16] : memref<1x128xf32, #tpu.memory_space<vmem>>, vector<1x128xf32>
    %20 = vector.broadcast %19 : vector<1x128xf32> to vector<128x128xf32>
    %21 = arith.addf %18, %20 : vector<128x128xf32>
    %22 = arith.truncf %21 : vector<128x128xf32> to vector<128x128xbf16>
    %c0_17 = arith.constant 0 : index
    %c0_18 = arith.constant 0 : index
    %23 = vector.load %arg8[%c0_17, %c0_18] : memref<128x128xbf16, #tpu.memory_space<vmem>>, vector<128x128xbf16>
    tpu.vector_store %arg8[%c0_17, %c0_18], %22 {strides = array<i32>} : memref<128x128xbf16, #tpu.memory_space<vmem>>, vector<128x128xbf16>,
    return
  }
  func.func @transform_0(%arg0: i32) -> (i32, i32) {
    %c0_i32 = arith.constant 0 : i32
    %c0_i32_0 = arith.constant 0 : i32
    return %arg0, %c0_i32 : i32, i32
  }
  func.func @transform_1(%arg0: i32) -> (i32, i32) {
    %c0_i32 = arith.constant 0 : i32
    %c0_i32_0 = arith.constant 0 : i32
    %c0_i32_1 = arith.constant 0 : i32
    return %c0_i32, %c0_i32_0 : i32, i32
  }
  func.func @transform_2(%arg0: i32) -> (i32, i32) {
    %c0_i32 = arith.constant 0 : i32
    %c0_i32_0 = arith.constant 0 : i32
    %c0_i32_1 = arith.constant 0 : i32
    return %c0_i32, %c0_i32_0 : i32, i32
  }
  func.func @transform_3(%arg0: i32) -> (i32, i32) {
    %c0_i32 = arith.constant 0 : i32
    %c0_i32_0 = arith.constant 0 : i32
    %c0_i32_1 = arith.constant 0 : i32
    return %c0_i32, %c0_i32_0 : i32, i32
  }
  func.func @transform_4(%arg0: i32) -> (i32, i32) {
    %c0_i32 = arith.constant 0 : i32
    %c0_i32_0 = arith.constant 0 : i32
    %c0_i32_1 = arith.constant 0 : i32
    return %c0_i32, %c0_i32_0 : i32, i32
  }
  func.func @transform_5(%arg0: i32) -> (i32, i32) {
    %c0_i32 = arith.constant 0 : i32
    %c0_i32_0 = arith.constant 0 : i32
    %c0_i32_1 = arith.constant 0 : i32
    return %c0_i32, %c0_i32_0 : i32, i32
  }
  func.func @transform_6(%arg0: i32) -> (i32, i32) {
    %c0_i32 = arith.constant 0 : i32
    %c0_i32_0 = arith.constant 0 : i32
    %c0_i32_1 = arith.constant 0 : i32
    return %c0_i32, %c0_i32_0 : i32, i32
  }
  func.func @transform_7(%arg0: i32) -> (i32, i32) {
    %c0_i32 = arith.constant 0 : i32
    %c0_i32_0 = arith.constant 0 : i32
    return %arg0, %c0_i32 : i32, i32
  }
}

</mosaic_0001>

<bundles_post_ra>
// kernel: rnd_forward.1
= control target key start
LH: loop header
LB: loop body
LE: loop exit
PB: predicated region body
PF: predicated region fallthrough
CT: control target
= control target key end

     0   :  { %s1238_s1 = inlined_call_operand.vmem [shape: bf16[128,128], index: 1, kind: input, shape index: {}]   ;;  %s1239_s0 = inlined_call_operand.vmem [shape: bf16[128,128], index: 0, kind: input, shape index: {}]   ;;  %s1240_s3 = inlined_call_operand.vmem [shape: bf16[128,128], index: 3, kind: input, shape index: {}]   ;;  %s1241_s5 = inlined_call_operand.vmem [shape: bf16[128,128], index: 5, kind: input, shape index: {}]   ;;  %s1242_s2 = inlined_call_operand.vmem [shape: f32[1,128], index: 2, kind: input, shape index: {}]   ;;  %s1243_s4 = inlined_call_operand.vmem [shape: f32[1,128], index: 4, kind: input, shape index: {}]   ;;  %s1244_s6 = inlined_call_operand.vmem [shape: f32[1,128], index: 6, kind: input, shape index: {}]   ;;  %s1245_s7 = inlined_call_operand.vmem [shape: bf16[128,128], index: 7, kind: output, shape index: {}]  }
   0x1   :  { %v1001_v0 = vld [vmem:[%s1238_s1] sm:$0xff]   ;;  %v1002_v1 = vld [vmem:[%s1238_s1 + $0x8] sm:$0xff]   ;;  %v1003_v2 = vld [vmem:[%s1238_s1 + $0x10] sm:$0xff]  }
   0x2   :  { %889 = vmatprep.subr.bf16.mxu0 %v1001_v0  ;;  %v1004_v3 = vld [vmem:[%s1238_s1 + $0x18] sm:$0xff]   ;;  %v1009_v4 = vld [vmem:[%s1239_s0] sm:$0xff]   ;;  %v1006_v6 = vld [vmem:[%s1238_s1 + $0x28] sm:$0xff]  }
   0x3   :  { %890 = vmatpush3.bf16.msra.mxu0 %v1001_v0  ;;  %905 = vmatprep.mubr.bf16.mxu0 %v1009_v4  ;;  %v1005_v5 = vld [vmem:[%s1238_s1 + $0x20] sm:$0xff]   ;;  %v1018_v8 = vld [vmem:[%s1240_s3 + $0x8] sm:$0xff]   ;;  %v1007_v9 = vld [vmem:[%s1238_s1 + $0x30] sm:$0xff]  }
   0x4   :  { %891 = vmatprep.subr.bf16.mxu0 %v1002_v1  ;;  %v1017_v7 = vld [vmem:[%s1240_s3] sm:$0xff]   ;;  %v1019_v10 = vld [vmem:[%s1240_s3 + $0x10] sm:$0xff]   ;;  %v1008_v11 = vld [vmem:[%s1238_s1 + $0x38] sm:$0xff]  }
   0x5   :  { %921 = vmatprep.subr.bf16.mxu1 %v1017_v7  ;;  %v1020_v12 = vld [vmem:[%s1240_s3 + $0x18] sm:$0xff]   ;;  %v1021_v13 = vld [vmem:[%s1240_s3 + $0x20] sm:$0xff]   ;;  %v1010_v14 = vld [vmem:[%s1239_s0 + $0x8] sm:$0xff]  }
   0x6   :  { %922 = vmatpush3.bf16.msra.mxu1 %v1017_v7  ;;  %v1011_v15 = vld [vmem:[%s1239_s0 + $0x10] sm:$0xff]   ;;  %v1022_v16 = vld [vmem:[%s1240_s3 + $0x28] sm:$0xff]   ;;  %v1012_v17 = vld [vmem:[%s1239_s0 + $0x18] sm:$0xff]  }
   0x7   :  { %892 = vmatpush3.bf16.msra.mxu0 %v1002_v1  ;;  %923 = vmatprep.subr.bf16.mxu1 %v1018_v8  ;;  %v1013_v18 = vld [vmem:[%s1239_s0 + $0x20] sm:$0xff]   ;;  %v1014_v19 = vld [vmem:[%s1239_s0 + $0x28] sm:$0xff]   ;;  %v1015_v20 = vld [vmem:[%s1239_s0 + $0x30] sm:$0xff]  }
   0x8   :  { %893 = vmatprep.subr.bf16.mxu0 %v1003_v2  ;;  %v1016_v21 = vld [vmem:[%s1239_s0 + $0x38] sm:$0xff]   ;;  %v1023_v22 = vld [vmem:[%s1240_s3 + $0x30] sm:$0xff]   ;;  %v1025_v24 = vld [vmem:[%s1241_s5] sm:$0xff]  }
   0x9   :  { %v1024_v23 = vld [vmem:[%s1240_s3 + $0x38] sm:$0xff]   ;;  %v1026_v25 = vld [vmem:[%s1241_s5 + $0x8] sm:$0xff]   ;;  %v1027_v26 = vld [vmem:[%s1241_s5 + $0x10] sm:$0xff]  }
   0xa   :  { %924 = vmatpush3.bf16.msra.mxu1 %v1018_v8  ;;  %v1157_v27 = vld [vmem:[%s1241_s5 + $0x18] sm:$0xff]   ;;  %v1163_v28 = vld [vmem:[%s1241_s5 + $0x20] sm:$0xff]   ;;  %v1170_v29 = vld [vmem:[%s1241_s5 + $0x28] sm:$0xff]  }
   0xb   :  { %894 = vmatpush3.bf16.msra.mxu0 %v1003_v2  ;;  %925 = vmatprep.subr.bf16.mxu1 %v1019_v10  ;;  %v1178_v30 = vld [vmem:[%s1242_s2] ss:$0 sm:$0xff] }
   0xc   :  { %895 = vmatprep.subr.bf16.mxu0 %v1004_v3 }
   0xe   :  { %926 = vmatpush3.bf16.msra.mxu1 %v1019_v10 }
   0xf   :  { %896 = vmatpush3.bf16.msra.mxu0 %v1004_v3  ;;  %927 = vmatprep.subr.bf16.mxu1 %v1020_v12 }
  0x10   :  { %897 = vmatprep.subr.bf16.mxu0 %v1005_v5 }
  0x12   :  { %928 = vmatpush3.bf16.msra.mxu1 %v1020_v12 }
  0x13   :  { %898 = vmatpush3.bf16.msra.mxu0 %v1005_v5  ;;  %929 = vmatprep.subr.bf16.mxu1 %v1021_v13 }
  0x14   :  { %899 = vmatprep.subr.bf16.mxu0 %v1006_v6 }
  0x16   :  { %930 = vmatpush3.bf16.msra.mxu1 %v1021_v13 }
  0x17   :  { %900 = vmatpush3.bf16.msra.mxu0 %v1006_v6  ;;  %931 = vmatprep.subr.bf16.mxu1 %v1022_v16 }
  0x18   :  { %901 = vmatprep.subr.bf16.mxu0 %v1007_v9 }
  0x1a   :  { %932 = vmatpush3.bf16.msra.mxu1 %v1022_v16 }
  0x1b   :  { %902 = vmatpush3.bf16.msra.mxu0 %v1007_v9  ;;  %933 = vmatprep.subr.bf16.mxu1 %v1023_v22 }
  0x1c   :  { %903 = vmatprep.subr.bf16.mxu0 %v1008_v11 }
  0x1e   :  { %934 = vmatpush3.bf16.msra.mxu1 %v1023_v22 }
  0x1f   :  { %904 = vmatpush3.bf16.msra.mxu0 %v1008_v11  ;;  %935 = vmatprep.subr.bf16.mxu1 %v1024_v23 }
  0x20   :  { %953 = vmatprep.subr.bf16.mxu0 %v1025_v24 }
  0x22   :  { %906 = vmatmul.mubr.bf16.vlgmr.msra.gmra.mrb[0].mxu0 %v1010_v14  ;;  %936 = vmatpush3.bf16.msra.mxu1 %v1024_v23  ;;  %v1031_v23 = vld [vmem:[%s1241_s5 + $0x30] sm:$0xff]  }
  0x23   :  { %909 = vmatprep.mubr.bf16.mxu0 %v1011_v15  ;;  %985 = vmatprep.subr.bf16.mxu1 %v1025_v24 }
  0x24   :  { %954 = vmatpush3.bf16.msra.mxu0 %v1025_v24 }
  0x25   :  { %955 = vmatprep.subr.bf16.mxu0 %v1026_v25 }
  0x28   :  { %956 = vmatpush3.bf16.msra.mxu0 %v1026_v25 }
  0x29   :  { %957 = vmatprep.subr.bf16.mxu0 %v1027_v26 }
  0x2a   :  { %910 = vmatmul.mubr.bf16.gmra.mrb[4].mxu0 %v1012_v17 }
  0x2b   :  { %913 = vmatprep.mubr.bf16.mxu0 %v1013_v18 }
  0x2c   :  { %958 = vmatpush3.bf16.msra.mxu0 %v1027_v26 }
  0x2d   :  { %959 = vmatprep.subr.bf16.mxu0 %v1157_v27 }
  0x30   :  { %960 = vmatpush3.bf16.msra.mxu0 %v1157_v27 }
  0x31   :  { %961 = vmatprep.subr.bf16.mxu0 %v1163_v28 }
  0x32   :  { %914 = vmatmul.mubr.bf16.gmra.mrb[8].mxu0 %v1014_v19 }
  0x33   :  { %917 = vmatprep.mubr.bf16.mxu0 %v1015_v20 }
  0x34   :  { %962 = vmatpush3.bf16.msra.mxu0 %v1163_v28 }
  0x35   :  { %963 = vmatprep.subr.bf16.mxu0 %v1170_v29 }
  0x38   :  { %964 = vmatpush3.bf16.msra.mxu0 %v1170_v29 }
  0x39   :  { %965 = vmatprep.subr.bf16.mxu0 %v1031_v23 }
  0x3a   :  { %918 = vmatmul.mubr.bf16.gmra.mrb[12].mxu0 %v1016_v21 }
  0x3c   :  { %966 = vmatpush3.bf16.msra.mxu0 %v1031_v23 }
  0xf5   :  { %v907_v31 = vpop.f32.mrb[0].mxu0 }
  0xf6   :  { %v205_v32 = vadd.f32 %v907_v31, %v1178_v30  ;;  %v196_v33 = vpop.f32.mrb[1].mxu0 }
  0xf7   :  { %v197_v34 = vadd.f32 %v1178_v30, %v196_v33  ;;  %v908_v35 = vpop.f32.mrb[2].mxu0 }
  0xf8   :  { %v208_v36 = vadd.f32 %v908_v35, %v1178_v30  ;;  %v199_v37 = vpop.f32.mrb[3].mxu0  ;;  %v261_v39 = vmax.f32 %v205_v32, 0.0 }
  0xf9   :  { %v200_v38 = vadd.f32 %v1178_v30, %v199_v37  ;;  %v259_v41 = vmax.f32 %v197_v34, 0.0 }
  0xfa   :  { %v262_v40 = vmax.f32 %v208_v36, 0.0 }
  0xfb   :  { %v260_v42 = vmax.f32 %v200_v38, 0.0 }
  0xfc   :  { %v276_v43 = vpack.c.bf16 %v262_v40, %v261_v39 }
  0xfd   :  { %v911_v44 = vpop.f32.mrb[4].mxu0  ;;  %v275_v45 = vpack.c.bf16 %v260_v42, %v259_v41 }
  0xfe   :  { %v221_v46 = vadd.f32 %v911_v44, %v1178_v30  ;;  %v212_v47 = vpop.f32.mrb[5].mxu0 }
  0xff   :  { %v213_v48 = vadd.f32 %v1178_v30, %v212_v47  ;;  %v912_v49 = vpop.f32.mrb[6].mxu0  ;;  %937 = vmatprep.mubr.bf16.mxu1 %v275_v45 }
 0x100   :  { %v224_v50 = vadd.f32 %v912_v49, %v1178_v30  ;;  %v215_v51 = vpop.f32.mrb[7].mxu0  ;;  %938 = vmatmul.mubr.bf16.vlgmr.msra.gmra.mrb[0].mxu1 %v276_v43  ;;  %v265_v53 = vmax.f32 %v221_v46, 0.0 }
 0x101   :  { %v216_v52 = vadd.f32 %v1178_v30, %v215_v51  ;;  %993 = vmatpush3.bf16.msra.mxu1 %v1025_v24  ;;  %v263_v55 = vmax.f32 %v213_v48, 0.0  ;;  %v1032_v24 = vld [vmem:[%s1241_s5 + $0x38] sm:$0xff]  }
 0x102   :  { %v266_v54 = vmax.f32 %v224_v50, 0.0  ;;  %986 = vmatprep.subr.bf16.mxu1 %v1026_v25  ;;  %967 = vmatprep.subr.bf16.mxu0 %v1032_v24 }
 0x103   :  { %v264_v56 = vmax.f32 %v216_v52, 0.0  ;;  %968 = vmatpush3.bf16.msra.mxu0 %v1032_v24 }
 0x104   :  { %v278_v57 = vpack.c.bf16 %v266_v54, %v265_v53 }
 0x105   :  { %v277_v58 = vpack.c.bf16 %v264_v56, %v263_v55  ;;  %v915_v59 = vpop.f32.mrb[8].mxu0  ;;  %994 = vmatpush3.bf16.msra.mxu1 %v1026_v25  ;;  %v744_v25 = vld [vmem:[%s1243_s4] ss:$0 sm:$0xff] }
 0x106   :  { %v237_v60 = vadd.f32 %v915_v59, %v1178_v30  ;;  %v228_v61 = vpop.f32.mrb[9].mxu0  ;;  %987 = vmatprep.subr.bf16.mxu1 %v1027_v26 }
 0x107   :  { %v229_v62 = vadd.f32 %v1178_v30, %v228_v61  ;;  %v916_v63 = vpop.f32.mrb[10].mxu0  ;;  %941 = vmatprep.mubr.bf16.mxu1 %v277_v58 }
 0x108   :  { %v240_v0 = vadd.f32 %v916_v63, %v1178_v30  ;;  %v231_v1 = vpop.f32.mrb[11].mxu0  ;;  %942 = vmatmul.mubr.bf16.gmra.mrb[4].mxu1 %v278_v57  ;;  %v269_v3 = vmax.f32 %v237_v60, 0.0 }
 0x109   :  { %v232_v2 = vadd.f32 %v1178_v30, %v231_v1  ;;  %995 = vmatpush3.bf16.msra.mxu1 %v1027_v26  ;;  %v267_v5 = vmax.f32 %v229_v62, 0.0 }
 0x10a   :  { %v270_v4 = vmax.f32 %v240_v0, 0.0  ;;  %988 = vmatprep.subr.bf16.mxu1 %v1157_v27 }
 0x10b   :  { %v268_v6 = vmax.f32 %v232_v2, 0.0 }
 0x10c   :  { %v280_v7 = vpack.c.bf16 %v270_v4, %v269_v3 }
 0x10d   :  { %v279_v8 = vpack.c.bf16 %v268_v6, %v267_v5  ;;  %v919_v9 = vpop.f32.mrb[12].mxu0  ;;  %996 = vmatpush3.bf16.msra.mxu1 %v1157_v27 }
 0x10e   :  { %v253_v10 = vadd.f32 %v919_v9, %v1178_v30  ;;  %v244_v11 = vpop.f32.mrb[13].mxu0  ;;  %989 = vmatprep.subr.bf16.mxu1 %v1163_v28 }
 0x10f   :  { %v245_v12 = vadd.f32 %v1178_v30, %v244_v11  ;;  %v920_v13 = vpop.f32.mrb[14].mxu0  ;;  %945 = vmatprep.mubr.bf16.mxu1 %v279_v8 }
 0x110   :  { %v256_v14 = vadd.f32 %v920_v13, %v1178_v30  ;;  %v247_v15 = vpop.f32.mrb[15].mxu0  ;;  %946 = vmatmul.mubr.bf16.gmra.mrb[8].mxu1 %v280_v7  ;;  %v273_v17 = vmax.f32 %v253_v10, 0.0 }
 0x111   :  { %v248_v16 = vadd.f32 %v1178_v30, %v247_v15  ;;  %997 = vmatpush3.bf16.msra.mxu1 %v1163_v28  ;;  %v271_v19 = vmax.f32 %v245_v12, 0.0 }
 0x112   :  { %v274_v18 = vmax.f32 %v256_v14, 0.0  ;;  %990 = vmatprep.subr.bf16.mxu1 %v1170_v29 }
 0x113   :  { %v272_v20 = vmax.f32 %v248_v16, 0.0 }
 0x114   :  { %v282_v21 = vpack.c.bf16 %v274_v18, %v273_v17 }
 0x115   :  { %v281_v22 = vpack.c.bf16 %v272_v20, %v271_v19  ;;  %998 = vmatpush3.bf16.msra.mxu1 %v1170_v29  ;;  %v753_v19 = vld [vmem:[%s1244_s6] ss:$0 sm:$0xff] }
 0x116   :  { %991 = vmatprep.subr.bf16.mxu1 %v1031_v23 }
 0x117   :  { %949 = vmatprep.mubr.bf16.mxu1 %v281_v22 }
 0x118   :  { %950 = vmatmul.mubr.bf16.gmra.mrb[12].mxu1 %v282_v21 }
 0x119   :  { %999 = vmatpush3.bf16.msra.mxu1 %v1031_v23 }
 0x11a   :  { %992 = vmatprep.subr.bf16.mxu1 %v1032_v24 }
 0x11d   :  { %1000 = vmatpush3.bf16.msra.mxu1 %v1032_v24 }
 0x1d3   :  { %v939_v26 = vpop.f32.mrb[0].mxu1 }
 0x1d4   :  { %v397_v27 = vadd.f32 %v939_v26, %v744_v25  ;;  %v388_v28 = vpop.f32.mrb[1].mxu1 }
 0x1d5   :  { %v389_v29 = vadd.f32 %v744_v25, %v388_v28  ;;  %v940_v30 = vpop.f32.mrb[2].mxu1 }
 0x1d6   :  { %v400_v31 = vadd.f32 %v940_v30, %v744_v25  ;;  %v391_v32 = vpop.f32.mrb[3].mxu1  ;;  %v453_v34 = vmax.f32 %v397_v27, 0.0 }
 0x1d7   :  { %v392_v33 = vadd.f32 %v744_v25, %v391_v32  ;;  %v451_v36 = vmax.f32 %v389_v29, 0.0 }
 0x1d8   :  { %v454_v35 = vmax.f32 %v400_v31, 0.0 }
 0x1d9   :  { %v452_v37 = vmax.f32 %v392_v33, 0.0 }
 0x1da   :  { %v468_v38 = vpack.c.bf16 %v454_v35, %v453_v34 }
 0x1db   :  { %v467_v39 = vpack.c.bf16 %v452_v37, %v451_v36  ;;  %v943_v40 = vpop.f32.mrb[4].mxu1 }
 0x1dc   :  { %v413_v41 = vadd.f32 %v943_v40, %v744_v25  ;;  %v404_v42 = vpop.f32.mrb[5].mxu1 }
 0x1dd   :  { %v405_v43 = vadd.f32 %v744_v25, %v404_v42  ;;  %v944_v44 = vpop.f32.mrb[6].mxu1  ;;  %969 = vmatprep.mubr.bf16.mxu0 %v467_v39 }
 0x1de   :  { %v416_v45 = vadd.f32 %v944_v44, %v744_v25  ;;  %v407_v46 = vpop.f32.mrb[7].mxu1  ;;  %970 = vmatmul.mubr.bf16.vlgmr.msra.gmra.mrb[16].mxu0 %v468_v38  ;;  %v457_v48 = vmax.f32 %v413_v41, 0.0 }
 0x1df   :  { %v408_v47 = vadd.f32 %v744_v25, %v407_v46  ;;  %v455_v50 = vmax.f32 %v405_v43, 0.0 }
 0x1e0   :  { %v458_v49 = vmax.f32 %v416_v45, 0.0 }
 0x1e1   :  { %v456_v51 = vmax.f32 %v408_v47, 0.0 }
 0x1e2   :  { %v470_v52 = vpack.c.bf16 %v458_v49, %v457_v48 }
 0x1e3   :  { %v469_v53 = vpack.c.bf16 %v456_v51, %v455_v50  ;;  %v947_v54 = vpop.f32.mrb[8].mxu1 }
 0x1e4   :  { %v429_v55 = vadd.f32 %v947_v54, %v744_v25  ;;  %v420_v56 = vpop.f32.mrb[9].mxu1 }
 0x1e5   :  { %v421_v57 = vadd.f32 %v744_v25, %v420_v56  ;;  %v948_v58 = vpop.f32.mrb[10].mxu1  ;;  %973 = vmatprep.mubr.bf16.mxu0 %v469_v53 }
 0x1e6   :  { %v432_v59 = vadd.f32 %v948_v58, %v744_v25  ;;  %v423_v60 = vpop.f32.mrb[11].mxu1  ;;  %974 = vmatmul.mubr.bf16.gmra.mrb[20].mxu0 %v470_v52  ;;  %v461_v62 = vmax.f32 %v429_v55, 0.0 }
 0x1e7   :  { %v424_v61 = vadd.f32 %v744_v25, %v423_v60  ;;  %v459_v0 = vmax.f32 %v421_v57, 0.0 }
 0x1e8   :  { %v462_v63 = vmax.f32 %v432_v59, 0.0 }
 0x1e9   :  { %v460_v1 = vmax.f32 %v424_v61, 0.0 }
 0x1ea   :  { %v472_v2 = vpack.c.bf16 %v462_v63, %v461_v62 }
 0x1eb   :  { %v471_v3 = vpack.c.bf16 %v460_v1, %v459_v0  ;;  %v951_v4 = vpop.f32.mrb[12].mxu1 }
 0x1ec   :  { %v445_v5 = vadd.f32 %v951_v4, %v744_v25  ;;  %v436_v6 = vpop.f32.mrb[13].mxu1 }
 0x1ed   :  { %v437_v7 = vadd.f32 %v744_v25, %v436_v6  ;;  %v952_v8 = vpop.f32.mrb[14].mxu1  ;;  %977 = vmatprep.mubr.bf16.mxu1 %v471_v3 }
 0x1ee   :  { %v448_v9 = vadd.f32 %v952_v8, %v744_v25  ;;  %v439_v10 = vpop.f32.mrb[15].mxu1  ;;  %978 = vmatmul.mubr.bf16.vlgmr.msra.gmra.mrb[16].mxu1 %v472_v2  ;;  %v465_v12 = vmax.f32 %v445_v5, 0.0 }
 0x1ef   :  { %v440_v11 = vadd.f32 %v744_v25, %v439_v10  ;;  %v463_v14 = vmax.f32 %v437_v7, 0.0 }
 0x1f0   :  { %v466_v13 = vmax.f32 %v448_v9, 0.0 }
 0x1f1   :  { %v464_v15 = vmax.f32 %v440_v11, 0.0 }
 0x1f2   :  { %v474_v16 = vpack.c.bf16 %v466_v13, %v465_v12 }
 0x1f3   :  { %v473_v17 = vpack.c.bf16 %v464_v15, %v463_v14 }
 0x1f5   :  { %981 = vmatprep.mubr.bf16.mxu1 %v473_v17 }
 0x1f6   :  { %982 = vmatmul.mubr.bf16.gmra.mrb[20].mxu1 %v474_v16 }
 0x2b1   :  { %v971_v18 = vpop.f32.mrb[16].mxu0 }
 0x2b2   :  { %v580_v20 = vpop.f32.mrb[17].mxu0  ;;  %v589_v22 = vadd.f32 %v971_v18, %v753_v19 }
 0x2b3   :  { %v972_v21 = vpop.f32.mrb[18].mxu0  ;;  %v581_v26 = vadd.f32 %v753_v19, %v580_v20 }
 0x2b4   :  { %v592_v23 = vadd.f32 %v972_v21, %v753_v19  ;;  %v583_v24 = vpop.f32.mrb[19].mxu0 }
 0x2b5   :  { %v584_v25 = vadd.f32 %v753_v19, %v583_v24 }
 0x2b6   :  { %v802_v27 = vpack.c.bf16 %v592_v23, %v589_v22 }
 0x2b7   :  { %v797_v28 = vpack.c.bf16 %v584_v25, %v581_v26 }
 0x2b8   :  { %834 = vst [vmem:[%s1245_s7 + $0x8] sm:$0xff] %v802_v27  }
 0x2b9   :  { %798 = vst [vmem:[%s1245_s7] sm:$0xff] %v797_v28   ;;  %v975_v29 = vpop.f32.mrb[20].mxu0 }
 0x2ba   :  { %v596_v30 = vpop.f32.mrb[21].mxu0  ;;  %v605_v32 = vadd.f32 %v975_v29, %v753_v19 }
 0x2bb   :  { %v976_v31 = vpop.f32.mrb[22].mxu0  ;;  %v597_v35 = vadd.f32 %v753_v19, %v596_v30 }
 0x2bc   :  { %v608_v33 = vadd.f32 %v976_v31, %v753_v19  ;;  %v599_v34 = vpop.f32.mrb[23].mxu0 }
 0x2bd   :  { %v600_v36 = vadd.f32 %v753_v19, %v599_v34 }
 0x2be   :  { %v812_v37 = vpack.c.bf16 %v608_v33, %v605_v32 }
 0x2bf   :  { %v807_v38 = vpack.c.bf16 %v600_v36, %v597_v35 }
 0x2c0   :  { %836 = vst [vmem:[%s1245_s7 + $0x18] sm:$0xff] %v812_v37  }
 0x2c1   :  { %835 = vst [vmem:[%s1245_s7 + $0x10] sm:$0xff] %v807_v38   ;;  %v979_v39 = vpop.f32.mrb[16].mxu1 }
 0x2c2   :  { %v612_v40 = vpop.f32.mrb[17].mxu1  ;;  %v621_v42 = vadd.f32 %v979_v39, %v753_v19 }
 0x2c3   :  { %v980_v41 = vpop.f32.mrb[18].mxu1  ;;  %v613_v45 = vadd.f32 %v753_v19, %v612_v40 }
 0x2c4   :  { %v624_v43 = vadd.f32 %v980_v41, %v753_v19  ;;  %v615_v44 = vpop.f32.mrb[19].mxu1 }
 0x2c5   :  { %v616_v46 = vadd.f32 %v753_v19, %v615_v44 }
 0x2c6   :  { %v822_v47 = vpack.c.bf16 %v624_v43, %v621_v42 }
 0x2c7   :  { %v817_v48 = vpack.c.bf16 %v616_v46, %v613_v45 }
 0x2c8   :  { %838 = vst [vmem:[%s1245_s7 + $0x28] sm:$0xff] %v822_v47  }
 0x2c9   :  { %837 = vst [vmem:[%s1245_s7 + $0x20] sm:$0xff] %v817_v48   ;;  %v983_v49 = vpop.f32.mrb[20].mxu1 }
 0x2ca   :  { %v628_v50 = vpop.f32.mrb[21].mxu1  ;;  %v637_v52 = vadd.f32 %v983_v49, %v753_v19 }
 0x2cb   :  { %v984_v51 = vpop.f32.mrb[22].mxu1  ;;  %v629_v55 = vadd.f32 %v753_v19, %v628_v50 }
 0x2cc   :  { %v640_v53 = vadd.f32 %v984_v51, %v753_v19  ;;  %v631_v54 = vpop.f32.mrb[23].mxu1 }
 0x2cd   :  { %v632_v56 = vadd.f32 %v753_v19, %v631_v54 }
 0x2ce   :  { %v832_v57 = vpack.c.bf16 %v640_v53, %v637_v52 }
 0x2cf   :  { %v827_v58 = vpack.c.bf16 %v632_v56, %v629_v55 }
 0x2d0   :  { %840 = vst [vmem:[%s1245_s7 + $0x38] sm:$0xff] %v832_v57  }
 0x2d1   :  { %839 = vst [vmem:[%s1245_s7 + $0x30] sm:$0xff] %v827_v58  }

</bundles_post_ra>
